<compile_context>
chip_gen: v7x
topology: tpu7x:2x2x1
jax: 0.10.0
libtpu: 0.0.40
codegen_flags: <defaults>
</compile_context>

<pallas_src>
import functools
import math

import jax
import jax.numpy as jnp
from jax.experimental import pallas as pl
from jax.experimental.pallas import tpu as pltpu


# ---------------------------------------------------------------------------
# Helpers: generation-aware sizing
# ---------------------------------------------------------------------------
def _vmem_budget_bytes(frac=0.75, default=64 * 1024 * 1024):
    """VMEM limit derived from the part: ~48 MiB on v7x, ~96 MiB on v5e/v6e."""
    try:
        cap = pltpu.get_tpu_info().vmem_capacity_bytes
    except Exception:
        cap = default
    return int(cap * frac)


def _pick_tile(n, max_tile, dtype):
    """Largest tile <= max_tile dividing n; multiple of 16 for packed (<32-bit)
    dtypes, 8 otherwise.  Falls back to the full dimension (always legal)."""
    mult = 16 if jnp.dtype(dtype).itemsize < 4 else 8
    if n <= max_tile:
        return n
    start = (max_tile // mult) * mult
    for t in range(start, mult - 1, -mult):
        if n % t == 0:
            return t
    return n


def _attn_step_vmem_bytes(g, tq, S, d_k, E, csize, asize, write_attn):
    """Rough per-grid-step VMEM working set of the attention kernel."""
    kv = 2 * 2 * g * S * d_k * csize            # K and V blocks, double buffered
    q = 2 * g * tq * d_k * csize                # Q block
    wo = 2 * g * d_k * E * csize + 2 * E * csize
    attn = (2 * g * tq * S * asize) if write_attn else 0
    live = 2 * g * tq * S * 4                   # f32 scores + softmax weights
    out = 2 * tq * E * 4 + tq * E * 4           # out block + f32 accumulator
    return kv + q + wo + attn + live + out


def _pick_head_group(num_heads, d_k, S, tq, E, cdt, attn_dtype, write_attn,
                     vmem_budget, head_group=None, target_lanes=256):
    """Smallest head group g (a divisor of H) with g*d_k >= target_lanes so the
    MXU sees wide operands; shrunk while the per-step working set overflows."""
    if head_group is not None:
        assert num_heads % head_group == 0
        return head_group
    divisors = [d for d in range(1, num_heads + 1) if num_heads % d == 0]
    g = next((d for d in divisors if d * d_k >= target_lanes), num_heads)
    csize = jnp.dtype(cdt).itemsize
    asize = jnp.dtype(attn_dtype).itemsize
    while g > 1 and _attn_step_vmem_bytes(g, tq, S, d_k, E, csize, asize,
                                          write_attn) > vmem_budget:
        g = max(d for d in divisors if d < g)
    return g


# ---------------------------------------------------------------------------
# Kernel 1: fused Q/K/V input projections (hoisted — each token projected once)
# ---------------------------------------------------------------------------
def _qkv_proj_kernel(xq_ref, xk_ref, xv_ref,
                     wq_ref, bq_ref, wk_ref, bk_ref, wv_ref, bv_ref,
                     qp_ref, kp_ref, vp_ref, *, scale):
    # Row tile (tm, E) x resident (E, E) weights; f32 accumulation on the MXU.
    qp = jnp.dot(xq_ref[...], wq_ref[...], preferred_element_type=jnp.float32)
    qp_ref[...] = ((qp + bq_ref[...]) * scale).astype(qp_ref.dtype)   # fold 1/sqrt(d_k)
    kp = jnp.dot(xk_ref[...], wk_ref[...], preferred_element_type=jnp.float32)
    kp_ref[...] = (kp + bk_ref[...]).astype(kp_ref.dtype)
    vp = jnp.dot(xv_ref[...], wv_ref[...], preferred_element_type=jnp.float32)
    vp_ref[...] = (vp + bv_ref[...]).astype(vp_ref.dtype)


def _qkv_projection(Qf, Kf, Vf, wq, bq, wk, bk, wv, bv, *,
                    tm, out_dtype, scale, vmem_limit):
    N, E = Qf.shape
    grid = (N // tm,)
    row_spec = pl.BlockSpec((tm, E), lambda i: (i, 0))
    w_spec = pl.BlockSpec((E, E), lambda i: (0, 0))     # resident across the grid
    b_spec = pl.BlockSpec((1, E), lambda i: (0, 0))
    out_sds = jax.ShapeDtypeStruct((N, E), out_dtype)

    in_isize = Qf.dtype.itemsize
    out_isize = jnp.dtype(out_dtype).itemsize
    w_isize = wq.dtype.itemsize
    cost = pl.CostEstimate(
        flops=int(6 * N * E * E),
        transcendentals=0,
        bytes_accessed=int(3 * N * E * (in_isize + out_isize)
                           + 3 * (E * E + E) * w_isize),
    )

    return pl.pallas_call(
        functools.partial(_qkv_proj_kernel, scale=scale),
        out_shape=(out_sds, out_sds, out_sds),
        grid_spec=pltpu.PrefetchScalarGridSpec(
            num_scalar_prefetch=0,
            grid=grid,
            in_specs=[row_spec, row_spec, row_spec,
                      w_spec, b_spec,        # WQ
                      w_spec, b_spec,        # WK
                      w_spec, b_spec],       # WV
            out_specs=[row_spec, row_spec, row_spec],
        ),
        compiler_params=pltpu.CompilerParams(
            dimension_semantics=("parallel",),
            vmem_limit_bytes=vmem_limit),
        cost_estimate=cost,
    )(Qf, Kf, Vf, wq, bq, wk, bk, wv, bv)


# ---------------------------------------------------------------------------
# Kernel 2: scaled-dot-product attention + output projection
# ---------------------------------------------------------------------------
def _mhsa_attn_kernel(q_ref, k_ref, v_ref, wo_ref, bo_ref,
                      out_ref, *rest,
                      group, compute_dtype, write_attn, approx_recip):
    # Per-step tiles:
    #   q_ref   : (g, tq, d_k)   pre-projected, pre-scaled query head group
    #   k_ref   : (g, S,  d_k)   pre-projected keys of this head group
    #   v_ref   : (g, S,  d_k)   pre-projected values of this head group
    #   wo_ref  : (g, d_k, E)    output-projection rows of this head group
    #   bo_ref  : (1, E)
    #   out_ref : (tq, E)        resident across the head-group axis
    #   attn_ref: (g, tq, S)     this group's softmax weights (optional output)
    #   acc_ref : (tq, E) f32    VMEM scratch accumulator
    if write_attn:
        attn_ref, acc_ref = rest
    else:
        (acc_ref,) = rest

    hg = pl.program_id(2)

    q = q_ref[...]
    k = k_ref[...]
    v = v_ref[...]

    # scores = q @ k^T per head, batched over the head-group axis (f32 acc).
    scores = jnp.einsum('gqd,gkd->gqk', q, k,
                        preferred_element_type=jnp.float32)          # (g, tq, S)

    # TODO(synk): optional attention mask (masked_fill(mask == 0, -inf)) is not
    # implemented; the reference forward is exercised with mask=None.

    m = jnp.max(scores, axis=-1, keepdims=True)
    e = jnp.exp(scores - m)
    denom = jnp.sum(e, axis=-1, keepdims=True)
    w = e * pl.reciprocal(denom, approx=approx_recip)                 # f32 softmax

    if write_attn:
        attn_ref[...] = w.astype(attn_ref.dtype)

    ctx = jnp.einsum('gqk,gkd->gqd', w.astype(compute_dtype), v,
                     preferred_element_type=jnp.float32)              # (g, tq, d_k)

    @pl.when(hg == 0)
    def _init():
        acc_ref[...] = jnp.broadcast_to(bo_ref[...], acc_ref.shape).astype(jnp.float32)

    # Output projection: sum over the heads of this group (unrolled, f32 acc).
    part = jnp.dot(ctx[0].astype(compute_dtype), wo_ref[0],
                   preferred_element_type=jnp.float32)
    for i in range(1, group):
        part = part + jnp.dot(ctx[i].astype(compute_dtype), wo_ref[i],
                              preferred_element_type=jnp.float32)
    acc_ref[...] += part

    @pl.when(hg == pl.num_programs(2) - 1)
    def _finalize():
        out_ref[...] = acc_ref[...].astype(out_ref.dtype)


# ---------------------------------------------------------------------------
# Wrapper
# ---------------------------------------------------------------------------
def multi_head_self_attention(Q, K, V, params, num_heads, *,
                              compute_dtype=None,
                              q_tile=256,
                              head_group=None,
                              return_attn_weights=True,
                              attn_dtype=None,
                              approx_softmax_recip=False):
    B, S, E = Q.shape
    assert E % num_heads == 0
    d_k = E // num_heads
    cdt = jnp.dtype(compute_dtype) if compute_dtype is not None else jnp.dtype(Q.dtype)
    out_dtype = jnp.dtype(Q.dtype)
    attn_out_dtype = jnp.dtype(attn_dtype) if attn_dtype is not None else jnp.dtype(Q.dtype)
    scale = 1.0 / math.sqrt(d_k)

    vmem_budget = _vmem_budget_bytes()

    # ---- 1) fused QKV projections (each token projected exactly once) -------
    wq = params["wq"].astype(cdt); bq = params["bq"].astype(cdt)
    wk = params["wk"].astype(cdt); bk = params["bk"].astype(cdt)
    wv = params["wv"].astype(cdt); bv = params["bv"].astype(cdt)

    N = B * S
    tm = _pick_tile(N, q_tile, cdt)
    qp, kp, vp = _qkv_projection(
        Q.reshape(N, E).astype(cdt),
        K.reshape(N, E).astype(cdt),
        V.reshape(N, E).astype(cdt),
        wq, bq, wk, bk, wv, bv,
        tm=tm, out_dtype=cdt, scale=scale, vmem_limit=vmem_budget)

    # ---- 2) layout plumbing: head-major (B, H, S, d_k) so the attention kernel
    #         DMAs only the d_k-wide head slices it needs (no lane slicing). ----
    def to_heads(x):
        return x.reshape(B, S, num_heads, d_k).transpose(0, 2, 1, 3)
    qh, kh, vh = to_heads(qp), to_heads(kp), to_heads(vp)

    # ---- 3) attention + output projection ------------------------------------
    wo = params["wo"].reshape(num_heads, d_k, E).astype(cdt)   # head-major rows
    bo = params["bo"].astype(cdt)                              # (1, E)

    tq = _pick_tile(S, q_tile, cdt)
    g = _pick_head_group(num_heads, d_k, S, tq, E, cdt, attn_out_dtype,
                         return_attn_weights, vmem_budget, head_group)
    n_q = S // tq
    n_hg = num_heads // g
    grid = (B, n_q, n_hg)

    q_spec = pl.BlockSpec((None, g, tq, d_k), lambda b, qi, hg: (b, hg, qi, 0))
    kv_spec = pl.BlockSpec((None, g, S, d_k), lambda b, qi, hg: (b, hg, 0, 0))
    wo_spec = pl.BlockSpec((g, d_k, E), lambda b, qi, hg: (hg, 0, 0))
    bo_spec = pl.BlockSpec((1, E), lambda b, qi, hg: (0, 0))
    out_spec = pl.BlockSpec((None, tq, E), lambda b, qi, hg: (b, qi, 0))  # resident over hg

    out_sds = jax.ShapeDtypeStruct((B, S, E), out_dtype)
    in_specs = [q_spec, kv_spec, kv_spec, wo_spec, bo_spec]
    if return_attn_weights:
        attn_spec = pl.BlockSpec((None, g, tq, S), lambda b, qi, hg: (b, hg, qi, 0))
        out_specs = [out_spec, attn_spec]
        out_shape = (out_sds,
                     jax.ShapeDtypeStruct((B, num_heads, S, S), attn_out_dtype))
    else:
        out_specs = [out_spec]
        out_shape = (out_sds,)

    kernel = functools.partial(
        _mhsa_attn_kernel,
        group=g,
        compute_dtype=cdt,
        write_attn=return_attn_weights,
        approx_recip=approx_softmax_recip)

    csize = jnp.dtype(cdt).itemsize
    attn_bytes = (B * num_heads * S * S * jnp.dtype(attn_out_dtype).itemsize
                  if return_attn_weights else 0)
    cost = pl.CostEstimate(
        flops=int(B * (4 * S * S * E + 2 * S * E * E)),
        transcendentals=int(B * num_heads * S * S),
        bytes_accessed=int(csize * (B * S * E + 2 * n_q * B * S * E + E * E + E)
                           + out_dtype.itemsize * B * S * E
                           + attn_bytes),
    )

    results = pl.pallas_call(
        kernel,
        out_shape=out_shape,
        grid_spec=pltpu.PrefetchScalarGridSpec(
            num_scalar_prefetch=0,
            grid=grid,
            in_specs=in_specs,
            out_specs=out_specs,
            scratch_shapes=[pltpu.VMEM((tq, E), jnp.float32)]),
        compiler_params=pltpu.CompilerParams(
            dimension_semantics=("parallel", "parallel", "arbitrary"),
            vmem_limit_bytes=vmem_budget),
        cost_estimate=cost,
    )(qh, kh, vh, wo, bo)

    if return_attn_weights:
        out, attn_w = results
        return out, attn_w
    return results[0], None


# ---------------------------------------------------------------------------
# Pure-JAX reference mirroring the PyTorch forward
# ---------------------------------------------------------------------------
def _reference(Q, K, V, params, num_heads):
    B, S, E = Q.shape
    d_k = E // num_heads

    def lin(x, w, b):
        return x @ w + b[0]

    def split_heads(x):
        return x.reshape(B, S, num_heads, d_k).transpose(0, 2, 1, 3)

    q = split_heads(lin(Q, params["wq"], params["bq"]))
    k = split_heads(lin(K, params["wk"], params["bk"]))
    v = split_heads(lin(V, params["wv"], params["bv"]))

    scores = jnp.einsum("bhqd,bhkd->bhqk", q, k) / math.sqrt(d_k)
    w = jax.nn.softmax(scores, axis=-1)
    ctx = jnp.einsum("bhqk,bhkd->bhqd", w, v)
    ctx = ctx.transpose(0, 2, 1, 3).reshape(B, S, E)
    out = lin(ctx, params["wo"], params["bo"])
    return out, w


if __name__ == "__main__":
    B, S, E, H = 2, 8, 32, 4

    key = jax.random.PRNGKey(0)
    keys = jax.random.split(key, 11)

    Q = jax.random.normal(keys[0], (B, S, E), dtype=jnp.float32)
    K = jax.random.normal(keys[1], (B, S, E), dtype=jnp.float32)
    V = jax.random.normal(keys[2], (B, S, E), dtype=jnp.float32)

    # "nn.Linear"-shaped parameters stored as [in, out]; biases as [1, out].
    init = 1.0 / math.sqrt(E)
    params = {
        "wq": jax.random.uniform(keys[3], (E, E), jnp.float32, -init, init),
        "bq": jax.random.uniform(keys[4], (1, E), jnp.float32, -init, init),
        "wk": jax.random.uniform(keys[5], (E, E), jnp.float32, -init, init),
        "bk": jax.random.uniform(keys[6], (1, E), jnp.float32, -init, init),
        "wv": jax.random.uniform(keys[7], (E, E), jnp.float32, -init, init),
        "bv": jax.random.uniform(keys[8], (1, E), jnp.float32, -init, init),
        "wo": jax.random.uniform(keys[9], (E, E), jnp.float32, -init, init),
        "bo": jax.random.uniform(keys[10], (1, E), jnp.float32, -init, init),
    }

    ref_out, ref_w = _reference(Q, K, V, params, H)

    # f32 path: exact parity with the PyTorch-equivalent reference.
    out, attn_w = multi_head_self_attention(Q, K, V, params, H)
    jax.block_until_ready((out, attn_w))
    assert out.shape == (B, S, E) and attn_w.shape == (B, H, S, S)
    assert jnp.allclose(out, ref_out, atol=1e-5, rtol=1e-5)
    assert jnp.allclose(attn_w, ref_w, atol=1e-5, rtol=1e-5)

    # Output-only path (skips the (B,H,S,S) writeback entirely).
    out_only, no_w = multi_head_self_attention(Q, K, V, params, H,
                                               return_attn_weights=False)
    jax.block_until_ready(out_only)
    assert no_w is None
    assert jnp.allclose(out_only, ref_out, atol=1e-5, rtol=1e-5)

    # bf16 MXU path (f32 accumulation + f32 softmax stats): looser tolerance.
    out16, attn16 = multi_head_self_attention(Q, K, V, params, H,
                                              compute_dtype=jnp.bfloat16)
    jax.block_until_ready((out16, attn16))
    assert jnp.allclose(out16, ref_out, atol=1e-1, rtol=1e-1)
    assert jnp.allclose(attn16, ref_w, atol=5e-2, rtol=5e-2)

    print("KERNEL_OK")
</pallas_src>

<mosaic_0001>
module attributes {stable_mosaic.version = 11 : i64} {
  func.func @_qkv_proj_kernel(%arg0: i32, %arg1: memref<16x32xf32, #tpu.memory_space<vmem>>, %arg2: memref<16x32xf32, #tpu.memory_space<vmem>>, %arg3: memref<16x32xf32, #tpu.memory_space<vmem>>, %arg4: memref<32x32xf32, #tpu.memory_space<vmem>>, %arg5: memref<1x32xf32, #tpu.memory_space<vmem>>, %arg6: memref<32x32xf32, #tpu.memory_space<vmem>>, %arg7: memref<1x32xf32, #tpu.memory_space<vmem>>, %arg8: memref<32x32xf32, #tpu.memory_space<vmem>>, %arg9: memref<1x32xf32, #tpu.memory_space<vmem>>, %arg10: memref<16x32xf32, #tpu.memory_space<vmem>>, %arg11: memref<16x32xf32, #tpu.memory_space<vmem>>, %arg12: memref<16x32xf32, #tpu.memory_space<vmem>>) attributes {dimension_semantics = [#tpu.dimension_semantics<parallel>], iteration_bounds = array<i64: 1>, scalar_prefetch = 0 : i64, scratch_operands = 0 : i64, tpu.core_type = #tpu.core_type<tc>, window_params = [{transform_indices = @transform_0, window_bounds = array<i64: 16, 32>}, {transform_indices = @transform_1, window_bounds = array<i64: 16, 32>}, {transform_indices = @transform_2, window_bounds = array<i64: 16, 32>}, {pipeline_mode = #tpu.pipeline_mode<synchronous>, transform_indices = @transform_3, window_bounds = array<i64: 32, 32>}, {pipeline_mode = #tpu.pipeline_mode<synchronous>, transform_indices = @transform_4, window_bounds = array<i64: 1, 32>}, {pipeline_mode = #tpu.pipeline_mode<synchronous>, transform_indices = @transform_5, window_bounds = array<i64: 32, 32>}, {pipeline_mode = #tpu.pipeline_mode<synchronous>, transform_indices = @transform_6, window_bounds = array<i64: 1, 32>}, {pipeline_mode = #tpu.pipeline_mode<synchronous>, transform_indices = @transform_7, window_bounds = array<i64: 32, 32>}, {pipeline_mode = #tpu.pipeline_mode<synchronous>, transform_indices = @transform_8, window_bounds = array<i64: 1, 32>}, {transform_indices = @transform_9, window_bounds = array<i64: 16, 32>}, {transform_indices = @transform_10, window_bounds = array<i64: 16, 32>}, {transform_indices = @transform_11, window_bounds = array<i64: 16, 32>}]} {
    %c0 = arith.constant 0 : index
    %c0_0 = arith.constant 0 : index
    %0 = vector.load %arg1[%c0, %c0_0] : memref<16x32xf32, #tpu.memory_space<vmem>>, vector<16x32xf32>
    %c0_1 = arith.constant 0 : index
    %c0_2 = arith.constant 0 : index
    %1 = vector.load %arg4[%c0_1, %c0_2] : memref<32x32xf32, #tpu.memory_space<vmem>>, vector<32x32xf32>
    %cst = arith.constant dense<0.000000e+00> : vector<16x32xf32>
    %2 = tpu.matmul %0, %1, %cst {dimension_numbers = #tpu.dot_dimension_numbers<[1], [0], [0], [1], [0, 0, 1, 1], [], []>} : vector<16x32xf32>, vector<32x32xf32>, vector<16x32xf32> -> vector<16x32xf32>
    %c0_3 = arith.constant 0 : index
    %c0_4 = arith.constant 0 : index
    %3 = vector.load %arg5[%c0_3, %c0_4] : memref<1x32xf32, #tpu.memory_space<vmem>>, vector<1x32xf32>
    %4 = vector.broadcast %3 : vector<1x32xf32> to vector<16x32xf32>
    %5 = arith.addf %2, %4 : vector<16x32xf32>
    %cst_5 = arith.constant 0.353553385 : f32
    %6 = vector.broadcast %cst_5 : f32 to vector<16x32xf32>
    %7 = arith.mulf %5, %6 : vector<16x32xf32>
    %c0_6 = arith.constant 0 : index
    %c0_7 = arith.constant 0 : index
    %8 = vector.load %arg10[%c0_6, %c0_7] : memref<16x32xf32, #tpu.memory_space<vmem>>, vector<16x32xf32>
    tpu.vector_store %arg10[%c0_6, %c0_7], %7 {strides = array<i32>} : memref<16x32xf32, #tpu.memory_space<vmem>>, vector<16x32xf32>,
    %c0_8 = arith.constant 0 : index
    %c0_9 = arith.constant 0 : index
    %9 = vector.load %arg2[%c0_8, %c0_9] : memref<16x32xf32, #tpu.memory_space<vmem>>, vector<16x32xf32>
    %c0_10 = arith.constant 0 : index
    %c0_11 = arith.constant 0 : index
    %10 = vector.load %arg6[%c0_10, %c0_11] : memref<32x32xf32, #tpu.memory_space<vmem>>, vector<32x32xf32>
    %cst_12 = arith.constant dense<0.000000e+00> : vector<16x32xf32>
    %11 = tpu.matmul %9, %10, %cst_12 {dimension_numbers = #tpu.dot_dimension_numbers<[1], [0], [0], [1], [0, 0, 1, 1], [], []>} : vector<16x32xf32>, vector<32x32xf32>, vector<16x32xf32> -> vector<16x32xf32>
    %c0_13 = arith.constant 0 : index
    %c0_14 = arith.constant 0 : index
    %12 = vector.load %arg7[%c0_13, %c0_14] : memref<1x32xf32, #tpu.memory_space<vmem>>, vector<1x32xf32>
    %13 = vector.broadcast %12 : vector<1x32xf32> to vector<16x32xf32>
    %14 = arith.addf %11, %13 : vector<16x32xf32>
    %c0_15 = arith.constant 0 : index
    %c0_16 = arith.constant 0 : index
    %15 = vector.load %arg11[%c0_15, %c0_16] : memref<16x32xf32, #tpu.memory_space<vmem>>, vector<16x32xf32>
    tpu.vector_store %arg11[%c0_15, %c0_16], %14 {strides = array<i32>} : memref<16x32xf32, #tpu.memory_space<vmem>>, vector<16x32xf32>,
    %c0_17 = arith.constant 0 : index
    %c0_18 = arith.constant 0 : index
    %16 = vector.load %arg3[%c0_17, %c0_18] : memref<16x32xf32, #tpu.memory_space<vmem>>, vector<16x32xf32>
    %c0_19 = arith.constant 0 : index
    %c0_20 = arith.constant 0 : index
    %17 = vector.load %arg8[%c0_19, %c0_20] : memref<32x32xf32, #tpu.memory_space<vmem>>, vector<32x32xf32>
    %cst_21 = arith.constant dense<0.000000e+00> : vector<16x32xf32>
    %18 = tpu.matmul %16, %17, %cst_21 {dimension_numbers = #tpu.dot_dimension_numbers<[1], [0], [0], [1], [0, 0, 1, 1], [], []>} : vector<16x32xf32>, vector<32x32xf32>, vector<16x32xf32> -> vector<16x32xf32>
    %c0_22 = arith.constant 0 : index
    %c0_23 = arith.constant 0 : index
    %19 = vector.load %arg9[%c0_22, %c0_23] : memref<1x32xf32, #tpu.memory_space<vmem>>, vector<1x32xf32>
    %20 = vector.broadcast %19 : vector<1x32xf32> to vector<16x32xf32>
    %21 = arith.addf %18, %20 : vector<16x32xf32>
    %c0_24 = arith.constant 0 : index
    %c0_25 = arith.constant 0 : index
    %22 = vector.load %arg12[%c0_24, %c0_25] : memref<16x32xf32, #tpu.memory_space<vmem>>, vector<16x32xf32>
    tpu.vector_store %arg12[%c0_24, %c0_25], %21 {strides = array<i32>} : memref<16x32xf32, #tpu.memory_space<vmem>>, vector<16x32xf32>,
    return
  }
  func.func @transform_0(%arg0: i32) -> (i32, i32) {
    %c0_i32 = arith.constant 0 : i32
    %c0_i32_0 = arith.constant 0 : i32
    return %arg0, %c0_i32 : i32, i32
  }
  func.func @transform_1(%arg0: i32) -> (i32, i32) {
    %c0_i32 = arith.constant 0 : i32
    %c0_i32_0 = arith.constant 0 : i32
    return %arg0, %c0_i32 : i32, i32
  }
  func.func @transform_2(%arg0: i32) -> (i32, i32) {
    %c0_i32 = arith.constant 0 : i32
    %c0_i32_0 = arith.constant 0 : i32
    return %arg0, %c0_i32 : i32, i32
  }
  func.func @transform_3(%arg0: i32) -> (i32, i32) {
    %c0_i32 = arith.constant 0 : i32
    %c0_i32_0 = arith.constant 0 : i32
    %c0_i32_1 = arith.constant 0 : i32
    return %c0_i32, %c0_i32_0 : i32, i32
  }
  func.func @transform_4(%arg0: i32) -> (i32, i32) {
    %c0_i32 = arith.constant 0 : i32
    %c0_i32_0 = arith.constant 0 : i32
    %c0_i32_1 = arith.constant 0 : i32
    return %c0_i32, %c0_i32_0 : i32, i32
  }
  func.func @transform_5(%arg0: i32) -> (i32, i32) {
    %c0_i32 = arith.constant 0 : i32
    %c0_i32_0 = arith.constant 0 : i32
    %c0_i32_1 = arith.constant 0 : i32
    return %c0_i32, %c0_i32_0 : i32, i32
  }
  func.func @transform_6(%arg0: i32) -> (i32, i32) {
    %c0_i32 = arith.constant 0 : i32
    %c0_i32_0 = arith.constant 0 : i32
    %c0_i32_1 = arith.constant 0 : i32
    return %c0_i32, %c0_i32_0 : i32, i32
  }
  func.func @transform_7(%arg0: i32) -> (i32, i32) {
    %c0_i32 = arith.constant 0 : i32
    %c0_i32_0 = arith.constant 0 : i32
    %c0_i32_1 = arith.constant 0 : i32
    return %c0_i32, %c0_i32_0 : i32, i32
  }
  func.func @transform_8(%arg0: i32) -> (i32, i32) {
    %c0_i32 = arith.constant 0 : i32
    %c0_i32_0 = arith.constant 0 : i32
    %c0_i32_1 = arith.constant 0 : i32
    return %c0_i32, %c0_i32_0 : i32, i32
  }
  func.func @transform_9(%arg0: i32) -> (i32, i32) {
    %c0_i32 = arith.constant 0 : i32
    %c0_i32_0 = arith.constant 0 : i32
    return %arg0, %c0_i32 : i32, i32
  }
  func.func @transform_10(%arg0: i32) -> (i32, i32) {
    %c0_i32 = arith.constant 0 : i32
    %c0_i32_0 = arith.constant 0 : i32
    return %arg0, %c0_i32 : i32, i32
  }
  func.func @transform_11(%arg0: i32) -> (i32, i32) {
    %c0_i32 = arith.constant 0 : i32
    %c0_i32_0 = arith.constant 0 : i32
    return %arg0, %c0_i32 : i32, i32
  }
}

</mosaic_0001>

<bundles_post_ra>
// kernel: tpu_custom_call.1
= control target key start
LH: loop header
LB: loop body
LE: loop exit
PB: predicated region body
PF: predicated region fallthrough
CT: control target
= control target key end

     0   :  { %17 = vsyncpa [#allocation3], 0  ;;  %s1024_s0 = inlined_call_operand.hbm [shape: f32[16,32], index: 0, kind: input, shape index: {}]   ;;  %s1025_s1 = inlined_call_operand.hbm [shape: f32[16,32], index: 1, kind: input, shape index: {}]   ;;  %s1026_s2 = inlined_call_operand.hbm [shape: f32[16,32], index: 2, kind: input, shape index: {}]   ;;  %s1027_s3 = inlined_call_operand.hbm [shape: f32[32,32], index: 3, kind: input, shape index: {}]   ;;  %s1028_s4 = inlined_call_operand.vmem [shape: f32[1,32], index: 4, kind: input, shape index: {}]   ;;  %s1029_s5 = inlined_call_operand.hbm [shape: f32[32,32], index: 5, kind: input, shape index: {}]   ;;  %s1030_s6 = inlined_call_operand.vmem [shape: f32[1,32], index: 6, kind: input, shape index: {}]   ;;  %s1031_s7 = inlined_call_operand.hbm [shape: f32[32,32], index: 7, kind: input, shape index: {}]   ;;  %s1032_s8 = inlined_call_operand.vmem [shape: f32[1,32], index: 8, kind: input, shape index: {}]   ;;  %s1033_s9 = inlined_call_operand.hbm [shape: f32[16,32], index: 9, kind: output, shape index: {0}]   ;;  %s1034_s10 = inlined_call_operand.hbm [shape: f32[16,32], index: 10, kind: output, shape index: {1}]   ;;  %s1035_s11 = inlined_call_operand.hbm [shape: f32[16,32], index: 11, kind: output, shape index: {2}]  }
   0x1   :  { %18 = vsyncpa [#allocation6], 0 }
   0x2   :  { %19 = vsyncpa [#allocation9], 0 }
   0x3   :  { %20 = vsyncpa [#allocation12], 0 }
   0x4   :  { %21 = vsyncpa [#allocation4], 0 }
   0x5   :  { %22 = vsyncpa [#allocation15], 0  ;;  %s766_s17 = smov [#allocation5]   ;;  %s767_s19 = smov [#allocation8]  }
   0x6   :  { %s40_s18 = sshll.u32 %s766_s17, 4  ;;  %s64_s20 = sshll.u32 %s767_s19, 4  ;;  %s41_s18 = int_to_ptr.vmem [resolvable:$true] %s40_s18  ;;  %s837_s20 = int_to_ptr.vmem [resolvable:$true] %s64_s20 }
   0x7   :  { %s556_s23 = scalar_lea.hbm %s1025_s1, 256 }
   0x8   :  { %p557_p0 = scmp.ne.s32.totalorder %s1025_s1, %s556_s23  ;;  %p560_p1 = scmp.lt.u32.totalorder %s556_s23, %s1025_s1 }
   0xa   :  { %p562_p2 = pnand %p560_p1, %p557_p0 }
   0xc   :  { %565 = shalt.err (!%p562_p2)
}
   0xd   :  { %s566_s28 = scalar_lea.vmem %s41_s18, 256  ;;  %p571_p4 = scmp.lt.s32.totalorder %s41_s18, %s41_s18 }
   0xe   :  { %p567_p3 = scmp.ne.s32.totalorder %s41_s18, %s566_s28  ;;  %p572_p5 = scmp.lt.s32.totalorder %s566_s28, %s566_s28 }
  0x10   :  { %p573_p6 = por %p572_p5, %p571_p4 }
  0x12   :  { %p574_p7 = pnand %p573_p6, %p567_p3 }
  0x14   :  { %577 = shalt.err (!%p574_p7)
}
  0x15   :  { %s768_s29 = smov 128   ;;  %s769_s30 = smov 8  }
  0x16   :  { %46 = dma.hbm_to_vmem [thread:$0]  %s1025_s1, 256, %s41_s18, [#allocation6], %s768_s29, %s768_s29, %s769_s30  }
  0x17   :  { %s578_s16 = scalar_lea.hbm %s1027_s3, 512 }
  0x18   :  { %p579_p8 = scmp.ne.s32.totalorder %s1027_s3, %s578_s16  ;;  %p582_p9 = scmp.lt.u32.totalorder %s578_s16, %s1027_s3 }
  0x1a   :  { %p584_p10 = pnand %p582_p9, %p579_p8 }
  0x1c   :  { %587 = shalt.err (!%p584_p10)
}
  0x1d   :  { %s588_s23 = scalar_lea.vmem %s837_s20, 512  ;;  %p593_p12 = scmp.lt.s32.totalorder %s837_s20, %s837_s20 }
  0x1e   :  { %p589_p11 = scmp.ne.s32.totalorder %s837_s20, %s588_s23  ;;  %p594_p13 = scmp.lt.s32.totalorder %s588_s23, %s588_s23 }
  0x20   :  { %p595_p0 = por %p594_p13, %p593_p12 }
  0x22   :  { %p596_p1 = pnand %p595_p0, %p589_p11 }
  0x24   :  { %599 = shalt.err (!%p596_p1)
}
  0x25   :  { %70 = dma.hbm_to_vmem [thread:$0]  %s1027_s3, 512, %s837_s20, [#allocation9], %s768_s29, %s768_s29, %s769_s30  }
  0x26   :  { %s770_s24 = smov [#allocation2]   ;;  %s771_s26 = smov [#allocation7]  }
  0x27   :  { %s28_s25 = sshll.u32 %s770_s24, 4  ;;  %s52_s27 = sshll.u32 %s771_s26, 4  ;;  %s29_s25 = int_to_ptr.vmem [resolvable:$true] %s28_s25  ;;  %s874_s27 = int_to_ptr.vmem [resolvable:$true] %s52_s27 }
  0x28   :  { %s600_s13 = scalar_lea.hbm %s1024_s0, 256 }
  0x29   :  { %p601_p2 = scmp.ne.s32.totalorder %s1024_s0, %s600_s13  ;;  %p604_p3 = scmp.lt.u32.totalorder %s600_s13, %s1024_s0 }
  0x2b   :  { %p606_p4 = pnand %p604_p3, %p601_p2 }
  0x2d   :  { %609 = shalt.err (!%p606_p4)
}
  0x2e   :  { %s610_s3 = scalar_lea.vmem %s29_s25, 256  ;;  %p615_p6 = scmp.lt.s32.totalorder %s29_s25, %s29_s25 }
  0x2f   :  { %p611_p5 = scmp.ne.s32.totalorder %s29_s25, %s610_s3  ;;  %p616_p7 = scmp.lt.s32.totalorder %s610_s3, %s610_s3 }
  0x31   :  { %p617_p8 = por %p616_p7, %p615_p6 }
  0x33   :  { %p618_p9 = pnand %p617_p8, %p611_p5 }
  0x35   :  { %621 = shalt.err (!%p618_p9)
}
  0x36   :  { %34 = dma.hbm_to_vmem [thread:$0]  %s1024_s0, 256, %s29_s25, [#allocation3], %s768_s29, %s768_s29, %s769_s30  }
  0x37   :  { %s622_s23 = scalar_lea.hbm %s1026_s2, 256 }
  0x38   :  { %p623_p10 = scmp.ne.s32.totalorder %s1026_s2, %s622_s23  ;;  %p626_p11 = scmp.lt.u32.totalorder %s622_s23, %s1026_s2 }
  0x3a   :  { %p628_p12 = pnand %p626_p11, %p623_p10 }
  0x3c   :  { %631 = shalt.err (!%p628_p12)
}
  0x3d   :  { %s632_s28 = scalar_lea.vmem %s874_s27, 256  ;;  %p637_p0 = scmp.lt.s32.totalorder %s874_s27, %s874_s27 }
  0x3e   :  { %p633_p13 = scmp.ne.s32.totalorder %s874_s27, %s632_s28  ;;  %p638_p1 = scmp.lt.s32.totalorder %s632_s28, %s632_s28 }
  0x40   :  { %p639_p2 = por %p638_p1, %p637_p0 }
  0x42   :  { %p640_p3 = pnand %p639_p2, %p633_p13 }
  0x44   :  { %643 = shalt.err (!%p640_p3)
}
  0x45   :  { %58 = dma.hbm_to_vmem [thread:$0]  %s1026_s2, 256, %s874_s27, [#allocation6], %s768_s29, %s768_s29, %s769_s30  }
  0x46   :  { %s772_s12 = smov [#allocation10]   ;;  %s773_s14 = smov [#allocation11]  }
  0x47   :  { %s78_s13 = sshll.u32 %s772_s12, 4  ;;  %s92_s15 = sshll.u32 %s773_s14, 4  ;;  %s79_s13 = int_to_ptr.vmem [resolvable:$true] %s78_s13  ;;  %s911_s15 = int_to_ptr.vmem [resolvable:$true] %s92_s15 }
  0x48   :  { %s644_s3 = scalar_lea.hbm %s1029_s5, 512 }
  0x49   :  { %p645_p4 = scmp.ne.s32.totalorder %s1029_s5, %s644_s3  ;;  %p648_p5 = scmp.lt.u32.totalorder %s644_s3, %s1029_s5 }
  0x4b   :  { %p650_p6 = pnand %p648_p5, %p645_p4 }
  0x4d   :  { %653 = shalt.err (!%p650_p6)
}
  0x4e   :  { %s654_s2 = scalar_lea.vmem %s79_s13, 512  ;;  %p659_p8 = scmp.lt.s32.totalorder %s79_s13, %s79_s13 }
  0x4f   :  { %p655_p7 = scmp.ne.s32.totalorder %s79_s13, %s654_s2  ;;  %p660_p9 = scmp.lt.s32.totalorder %s654_s2, %s654_s2 }
  0x51   :  { %p661_p10 = por %p660_p9, %p659_p8 }
  0x53   :  { %p662_p11 = pnand %p661_p10, %p655_p7 }
  0x55   :  { %665 = shalt.err (!%p662_p11)
}
  0x56   :  { %84 = dma.hbm_to_vmem [thread:$0]  %s1029_s5, 512, %s79_s13, [#allocation9], %s768_s29, %s768_s29, %s769_s30  }
  0x57   :  { %s666_s24 = scalar_lea.hbm %s1031_s7, 512 }
  0x58   :  { %p667_p12 = scmp.ne.s32.totalorder %s1031_s7, %s666_s24  ;;  %p670_p13 = scmp.lt.u32.totalorder %s666_s24, %s1031_s7 }
  0x5a   :  { %p672_p0 = pnand %p670_p13, %p667_p12 }
  0x5c   :  { %675 = shalt.err (!%p672_p0)
}
  0x5d   :  { %s676_s12 = scalar_lea.vmem %s911_s15, 512  ;;  %p681_p2 = scmp.lt.s32.totalorder %s911_s15, %s911_s15 }
  0x5e   :  { %p677_p1 = scmp.ne.s32.totalorder %s911_s15, %s676_s12  ;;  %p682_p3 = scmp.lt.s32.totalorder %s676_s12, %s676_s12 }
  0x60   :  { %p683_p4 = por %p682_p3, %p681_p2 }
  0x62   :  { %p684_p5 = pnand %p683_p4, %p677_p1 }
  0x64   :  { %687 = shalt.err (!%p684_p5)
}
  0x65   :  { %98 = dma.hbm_to_vmem [thread:$0]  %s1031_s7, 512, %s911_s15, [#allocation12], %s768_s29, %s768_s29, %s769_s30  }
  0x66   :  { %754 = dma.done.wait [#allocation3], 256  }
  0x67   :  { %755 = vsyncadd [#allocation3], 4294967040 }
  0x68   :  { %756 = dma.done.wait [#allocation6], 512  }
  0x69   :  { %757 = vsyncadd [#allocation6], 4294966784 }
  0x6a   :  { %758 = dma.done.wait [#allocation9], 1024  }
  0x6b   :  { %759 = vsyncadd [#allocation9], 4294966272 }
  0x6c   :  { %760 = dma.done.wait [#allocation12], 512  }
  0x6d   :  { %761 = vsyncadd [#allocation12], 4294966784  ;;  %v121_v0 = vld [vmem:[#allocation8] sm:$0xff]  ;;  %v122_v1 = vld [vmem:[#allocation8 + $0x8] sm:$0xff]  ;;  %vm132_vm0 = vcmask 261120   ;;  %s774_s17 = smov [#allocation14]  }
  0x6e   :  { %v123_v2 = vld [vmem:[#allocation8 + $0x10] sm:$0xff]  ;;  %v521_v3 = vpack.c.bf16 %v122_v1, %v121_v0  ;;  %v124_v4 = vld [vmem:[#allocation8 + $0x18] sm:$0xff]  ;;  %v220_v5 = vld [vmem:[#allocation10] sm:$0xff]  ;;  %s427_s3 = sshll.u32 %s774_s17, 4  ;;  %s775_s20 = smov [#allocation13]   ;;  %s428_s3 = int_to_ptr.vmem [resolvable:$true] %s427_s3 }
  0x6f   :  { %v221_v6 = vld [vmem:[#allocation10 + $0x8] sm:$0xff]  ;;  %v525_v7 = vpack.c.bf16 %v124_v4, %v123_v2  ;;  %v119_v9 = vld [vmem:[#allocation2] sm:$0xff]  ;;  %v316_v10 = vld [vmem:[#allocation11] sm:$0xff]  ;;  %s415_s19 = sshll.u32 %s775_s20, 4  ;;  %s776_s21 = smov [#allocation16]   ;;  %s961_s19 = int_to_ptr.vmem [resolvable:$true] %s415_s19 }
  0x70   :  { %v529_v8 = vpack.c.bf16 %v221_v6, %v220_v5  ;;  %522 = vmatprep.subr.bf16.mxu0 %v521_v3  ;;  %496 = vmatprep.mubr.msk.f32.mxu0 %vm132_vm0, %v119_v9  ;;  %v317_v11 = vld [vmem:[#allocation11 + $0x8] sm:$0xff]  ;;  %v222_v12 = vld [vmem:[#allocation10 + $0x10] sm:$0xff]  ;;  %v223_v13 = vld [vmem:[#allocation10 + $0x18] sm:$0xff]  ;;  %s968_s22 = sshll.u32 %s776_s21, 4  ;;  %s688_s2 = scalar_lea.vmem %s428_s3, 256  ;;  %s440_s22 = int_to_ptr.vmem [resolvable:$true] %s968_s22 }
  0x71   :  { %524 = vmatpush3.bf16.msra.mxu0 %v521_v3  ;;  %v533_v14 = vpack.c.bf16 %v223_v13, %v222_v12  ;;  %v218_v15 = vld [vmem:[#allocation5] sm:$0xff]  ;;  %v537_v16 = vpack.c.bf16 %v317_v11, %v316_v10  ;;  %v318_v17 = vld [vmem:[#allocation11 + $0x10] sm:$0xff]  ;;  %v319_v18 = vld [vmem:[#allocation11 + $0x18] sm:$0xff]  ;;  %p689_p6 = scmp.ne.s32.totalorder %s428_s3, %s688_s2  ;;  %p693_p7 = scmp.lt.s32.totalorder %s428_s3, %s428_s3 }
  0x72   :  { %530 = vmatprep.subr.bf16.mxu1 %v529_v8  ;;  %526 = vmatprep.subr.bf16.mxu0 %v525_v7  ;;  %v120_v19 = vld [vmem:[#allocation2 + $0x8] sm:$0xff]  ;;  %v541_v20 = vpack.c.bf16 %v319_v18, %v318_v17  ;;  %v219_v21 = vld [vmem:[#allocation5 + $0x8] sm:$0xff]  ;;  %v314_v22 = vld [vmem:[#allocation7] sm:$0xff]  ;;  %p694_p8 = scmp.lt.s32.totalorder %s688_s2, %s688_s2 }
  0x73   :  { %532 = vmatpush3.bf16.msra.mxu1 %v529_v8  ;;  %507 = vmatprep.mubr.msk.f32.mxu1 %vm132_vm0, %v218_v15  ;;  %v315_v23 = vld [vmem:[#allocation7 + $0x8] sm:$0xff]  ;;  %v461_v24 = vld [vmem:[%s1028_s4] ss:$0 sm:$0xff] }
  0x74   :  { %534 = vmatprep.subr.bf16.mxu1 %v533_v14  ;;  %v464_v25 = vld [vmem:[%s1030_s6] ss:$0 sm:$0xff]  ;;  %p695_p9 = por %p694_p8, %p693_p7 }
  0x75   :  { %528 = vmatpush3.bf16.msra.mxu0 %v525_v7  ;;  %v467_v36 = vld [vmem:[%s1032_s8] ss:$0 sm:$0xff] }
  0x76   :  { %538 = vmatprep.subr.bf16.mxu0 %v537_v16  ;;  %p696_p10 = pnand %p695_p9, %p689_p6 }
  0x77   :  { %536 = vmatpush3.bf16.msra.mxu1 %v533_v14 }
  0x78   :  { %497 = vmatmul.mubr.msk.f32.vlgmr.msra.gmra.mrb[0].mxu0 %vm132_vm0, %v120_v19 }
  0x79   :  { %540 = vmatpush3.bf16.msra.mxu0 %v537_v16  ;;  %518 = vmatprep.mubr.msk.f32.mxu0 %vm132_vm0, %v314_v22 }
  0x7a   :  { %508 = vmatmul.mubr.msk.f32.vlgmr.msra.gmra.mrb[0].mxu1 %vm132_vm0, %v219_v21  ;;  %542 = vmatprep.subr.bf16.mxu0 %v541_v20 }
  0x7d   :  { %544 = vmatpush3.bf16.msra.mxu0 %v541_v20 }
  0x80   :  { %519 = vmatmul.mubr.msk.f32.vlgmr.msra.gmra.mrb[2].mxu0 %vm132_vm0, %v315_v23 }
 0x14b   :  { %v498_v26 = vpop.f32.mrb[0].mxu0 }
 0x14c   :  { %v211_v27 = vadd.f32 %v498_v26, %v461_v24  ;;  %v205_v28 = vpop.f32.mrb[1].mxu0 }
 0x14d   :  { %v509_v29 = vpop.f32.mrb[0].mxu1  ;;  %v206_v30 = vadd.f32 %v461_v24, %v205_v28 }
 0x14e   :  { %v309_v31 = vadd.f32 %v509_v29, %v464_v25  ;;  %v303_v32 = vpop.f32.mrb[1].mxu1  ;;  %v215_v33 = vmul.f32 0.35355338, %v211_v27 }
 0x14f   :  { %v304_v34 = vadd.f32 %v464_v25, %v303_v32  ;;  %v214_v35 = vmul.f32 0.35355338, %v206_v30 }
 0x150   :  { %313 = vst.msk [vmem:[#allocation14 + $0x8] sm:$0xff] %vm132_vm0, %v309_v31  ;;  %217 = vst.msk [vmem:[#allocation13 + $0x8] sm:$0xff] %vm132_vm0, %v215_v33 }
 0x151   :  { %312 = vst.msk [vmem:[#allocation14] sm:$0xff] %vm132_vm0, %v304_v34  ;;  %216 = vst.msk [vmem:[#allocation13] sm:$0xff] %vm132_vm0, %v214_v35 }
 0x152   :  { %699 = shalt.err (!%p696_p10)
}
 0x153   :  { %s700_s1 = scalar_lea.hbm %s1034_s10, 256 }
 0x154   :  { %p701_p11 = scmp.ne.s32.totalorder %s1034_s10, %s700_s1  ;;  %p704_p12 = scmp.lt.u32.totalorder %s700_s1, %s1034_s10 }
 0x156   :  { %p706_p13 = pnand %p704_p12, %p701_p11 }
 0x158   :  { %709 = shalt.err (!%p706_p13)
}
 0x159   :  { %433 = dma.vmem_to_hbm [thread:$0]  %s428_s3, 256, %s1034_s10, [#allocation15], %s768_s29, %s768_s29, %s769_s30  }
 0x15a   :  { %s710_s25 = scalar_lea.vmem %s961_s19, 256  ;;  %p715_p1 = scmp.lt.s32.totalorder %s961_s19, %s961_s19 }
 0x15b   :  { %p711_p0 = scmp.ne.s32.totalorder %s961_s19, %s710_s25  ;;  %p716_p2 = scmp.lt.s32.totalorder %s710_s25, %s710_s25 }
 0x15d   :  { %p717_p3 = por %p716_p2, %p715_p1 }
 0x15f   :  { %p718_p4 = pnand %p717_p3, %p711_p0 }
 0x161   :  { %721 = shalt.err (!%p718_p4)
}
 0x162   :  { %s722_s13 = scalar_lea.hbm %s1033_s9, 256 }
 0x163   :  { %p723_p5 = scmp.ne.s32.totalorder %s1033_s9, %s722_s13  ;;  %p726_p6 = scmp.lt.u32.totalorder %s722_s13, %s1033_s9 }
 0x165   :  { %p728_p7 = pnand %p726_p6, %p723_p5 }
 0x167   :  { %731 = shalt.err (!%p728_p7)
}
 0x168   :  { %421 = dma.vmem_to_hbm [thread:$0]  %s961_s19, 256, %s1033_s9, [#allocation4], %s768_s29, %s768_s29, %s769_s30   ;;  %v520_v37 = vpop.f32.mrb[2].mxu0 }
 0x169   :  { %v405_v38 = vadd.f32 %v520_v37, %v467_v36  ;;  %v399_v39 = vpop.f32.mrb[3].mxu0  ;;  %s732_s3 = scalar_lea.vmem %s440_s22, 256  ;;  %p737_p9 = scmp.lt.s32.totalorder %s440_s22, %s440_s22 }
 0x16a   :  { %v400_v40 = vadd.f32 %v467_v36, %v399_v39  ;;  %p733_p8 = scmp.ne.s32.totalorder %s440_s22, %s732_s3  ;;  %p738_p10 = scmp.lt.s32.totalorder %s732_s3, %s732_s3 }
 0x16b   :  { %409 = vst.msk [vmem:[#allocation16 + $0x8] sm:$0xff] %vm132_vm0, %v405_v38 }
 0x16c   :  { %408 = vst.msk [vmem:[#allocation16] sm:$0xff] %vm132_vm0, %v400_v40  ;;  %p739_p11 = por %p738_p10, %p737_p9 }
 0x16e   :  { %p740_p12 = pnand %p739_p11, %p733_p8 }
 0x170   :  { %743 = shalt.err (!%p740_p12)
}
 0x171   :  { %s744_s9 = scalar_lea.hbm %s1035_s11, 256 }
 0x172   :  { %p745_p13 = scmp.ne.s32.totalorder %s1035_s11, %s744_s9  ;;  %p748_p0 = scmp.lt.u32.totalorder %s744_s9, %s1035_s11 }
 0x174   :  { %p750_p1 = pnand %p748_p0, %p745_p13 }
 0x176   :  { %753 = shalt.err (!%p750_p1)
}
 0x177   :  { %445 = dma.vmem_to_hbm [thread:$0]  %s440_s22, 256, %s1035_s11, [#allocation15], %s768_s29, %s768_s29, %s769_s30  }
 0x178   :  { %762 = dma.done.wait [#allocation4], 256  }
 0x179   :  { %763 = vsyncadd [#allocation4], 4294967040 }
 0x17a   :  { %764 = dma.done.wait [#allocation15], 512  }
 0x17b   :  { %765 = vsyncadd [#allocation15], 4294966784 }
 0x17c   :  { %455 = vsyncpa [#allocation3], 1 }
 0x17d   :  { %456 = vsyncpa [#allocation6], 1 }
 0x17e   :  { %457 = vsyncpa [#allocation9], 1 }
 0x17f   :  { %458 = vsyncpa [#allocation12], 1 }
 0x180   :  { %459 = vsyncpa [#allocation4], 1 }
 0x181   :  { %460 = vsyncpa [#allocation15], 1 }

</bundles_post_ra>
